<compile_context>
chip_gen: v5e
topology: v5e:2x2
jax: 0.10.0
libtpu: 0.0.40
codegen_flags: <defaults>
</compile_context>

<pallas_src>
import jax
import jax.numpy as jnp
from jax.experimental import pallas as pl
from jax.experimental.pallas import tpu as pltpu


def _gcn_kernel(x_ref, adj_ref, w_ref, b_ref, out_ref):
    # x:   (B, L, H) float32
    # adj: (B, L, L) float32
    # w:   (H, H)    float32   (only the diagonal is used, per the einsum 'hh')
    # b:   (1, H)    float32
    x = x_ref[...]
    adj = adj_ref[...]
    w = w_ref[...]
    b = b_ref[...]

    H = w.shape[0]
    B, L, _ = adj.shape

    # diag(W) -> (1, H): mask + sublane reduce (no gather / no transpose).
    hi = jax.lax.broadcasted_iota(jnp.int32, (H, H), 0)
    hj = jax.lax.broadcasted_iota(jnp.int32, (H, H), 1)
    w_diag = jnp.sum(jnp.where(hi == hj, w, 0.0), axis=0, keepdims=True)      # (1, H)

    # diag(adj[b]) -> (B, L, 1): mask + lane reduce over the last axis.
    li = jax.lax.broadcasted_iota(jnp.int32, (B, L, L), 1)
    lj = jax.lax.broadcasted_iota(jnp.int32, (B, L, L), 2)
    adj_diag = jnp.sum(jnp.where(li == lj, adj, 0.0), axis=-1, keepdims=True)  # (B, L, 1)

    # einsum('blh,hh->blh')  == x * diag(W)
    # einsum('bll,blh->blh') == diag(adj) * support
    out = adj_diag * (x * w_diag) + b
    # ReLU; dropout (p=0.1) is identity in eval mode.
    out_ref[...] = jnp.maximum(out, 0.0)


@jax.jit
def gcn_forward_pallas(x, adj, weight, bias):
    """x: [B, L, H], adj: [B, L, L], weight: [H, H], bias: [H]. Returns [B, L, H] f32."""
    B, L, H = x.shape
    bias2 = bias.reshape(1, H).astype(jnp.float32)

    vmem = pltpu.MemorySpace.VMEM
    return pl.pallas_call(
        _gcn_kernel,
        out_shape=jax.ShapeDtypeStruct((B, L, H), jnp.float32),
        # No grid: one invocation handles the whole (tiny) problem — all arrays
        # are mapped whole into VMEM.
        in_specs=[
            pl.BlockSpec(memory_space=vmem),  # x
            pl.BlockSpec(memory_space=vmem),  # adj
            pl.BlockSpec(memory_space=vmem),  # weight
            pl.BlockSpec(memory_space=vmem),  # bias
        ],
        out_specs=pl.BlockSpec(memory_space=vmem),
    )(x.astype(jnp.float32), adj.astype(jnp.float32),
      weight.astype(jnp.float32), bias2)


def _reference(x, adj, weight, bias):
    # Exact same einsum strings as the PyTorch module (repeated-index == diagonal).
    support = jnp.einsum('blh,hh->blh', x, weight)
    out = jnp.einsum('bll,blh->blh', adj, support) + bias
    return jax.nn.relu(out)   # dropout == identity at inference


def _init_gc_params(key, in_features, out_features):
    # Matches GraphConvolution.reset_parameters: U(-stdv, stdv), stdv = 1/sqrt(out_features)
    kw, kb = jax.random.split(key)
    stdv = 1.0 / (out_features ** 0.5)
    w = jax.random.uniform(kw, (in_features, out_features), jnp.float32, -stdv, stdv)
    b = jax.random.uniform(kb, (out_features,), jnp.float32, -stdv, stdv)
    return w, b


if __name__ == "__main__":
    # The einsum 'blh,hh->blh' requires nfeat == nhid (square weight).
    B, L, H = 2, 16, 32   # batch=2, seq/nodes=16, hidden=32

    key = jax.random.PRNGKey(0)
    k_x, k_adj, k_w = jax.random.split(key, 3)

    x = jax.random.normal(k_x, (B, L, H), jnp.float32)
    adj = jax.random.uniform(k_adj, (B, L, L), jnp.float32)
    weight, bias = _init_gc_params(k_w, H, H)

    out = gcn_forward_pallas(x, adj, weight, bias)
    out = jax.block_until_ready(out)

    ref = _reference(x, adj, weight, bias)
    assert out.shape == (B, L, H)
    assert jnp.allclose(out, ref, atol=1e-5, rtol=1e-5), "mismatch vs reference"

    print("KERNEL_OK")
</pallas_src>

<mosaic_0001>
module attributes {stable_mosaic.version = 11 : i64} {
  func.func @_gcn_kernel(%arg0: memref<2x16x32xf32, #tpu.memory_space<vmem>>, %arg1: memref<2x16x16xf32, #tpu.memory_space<vmem>>, %arg2: memref<32x32xf32, #tpu.memory_space<vmem>>, %arg3: memref<1x32xf32, #tpu.memory_space<vmem>>, %arg4: memref<2x16x32xf32, #tpu.memory_space<vmem>>) attributes {dimension_semantics = [], scalar_prefetch = 0 : i64, scratch_operands = 0 : i64, tpu.core_type = #tpu.core_type<tc>} {
    %c0 = arith.constant 0 : index
    %c0_0 = arith.constant 0 : index
    %c0_1 = arith.constant 0 : index
    %0 = vector.load %arg0[%c0, %c0_0, %c0_1] : memref<2x16x32xf32, #tpu.memory_space<vmem>>, vector<2x16x32xf32>
    %c0_2 = arith.constant 0 : index
    %c0_3 = arith.constant 0 : index
    %c0_4 = arith.constant 0 : index
    %1 = vector.load %arg1[%c0_2, %c0_3, %c0_4] : memref<2x16x16xf32, #tpu.memory_space<vmem>>, vector<2x16x16xf32>
    %c0_5 = arith.constant 0 : index
    %c0_6 = arith.constant 0 : index
    %2 = vector.load %arg2[%c0_5, %c0_6] : memref<32x32xf32, #tpu.memory_space<vmem>>, vector<32x32xf32>
    %c0_7 = arith.constant 0 : index
    %c0_8 = arith.constant 0 : index
    %3 = vector.load %arg3[%c0_7, %c0_8] : memref<1x32xf32, #tpu.memory_space<vmem>>, vector<1x32xf32>
    %4 = tpu.iota {dimensions = array<i32: 0>} : vector<32x32xi32>
    %5 = tpu.iota {dimensions = array<i32: 1>} : vector<32x32xi32>
    %6 = arith.cmpi eq, %4, %5 : vector<32x32xi32>
    %cst = arith.constant 0.000000e+00 : f32
    %7 = vector.broadcast %cst : f32 to vector<32x32xf32>
    %8 = arith.select %6, %2, %7 : vector<32x32xi1>, vector<32x32xf32>
    %cst_9 = arith.constant dense<0.000000e+00> : vector<32xf32>
    %9 = vector.multi_reduction <add>, %8, %cst_9 [0] : vector<32x32xf32> to vector<32xf32>
    %10 = vector.shape_cast %9 : vector<32xf32> to vector<1x32xf32>
    %11 = tpu.iota {dimensions = array<i32: 1>} : vector<2x16x16xi32>
    %12 = tpu.iota {dimensions = array<i32: 2>} : vector<2x16x16xi32>
    %13 = arith.cmpi eq, %11, %12 : vector<2x16x16xi32>
    %cst_10 = arith.constant 0.000000e+00 : f32
    %14 = vector.broadcast %cst_10 : f32 to vector<2x16x16xf32>
    %15 = arith.select %13, %1, %14 : vector<2x16x16xi1>, vector<2x16x16xf32>
    %cst_11 = arith.constant dense<0.000000e+00> : vector<2x16xf32>
    %16 = vector.multi_reduction <add>, %15, %cst_11 [2] : vector<2x16x16xf32> to vector<2x16xf32>
    %17 = vector.shape_cast %16 : vector<2x16xf32> to vector<2x16x1xf32>
    %18 = vector.shape_cast %10 : vector<1x32xf32> to vector<1x1x32xf32>
    %19 = vector.broadcast %18 : vector<1x1x32xf32> to vector<2x16x32xf32>
    %20 = arith.mulf %0, %19 : vector<2x16x32xf32>
    %21 = vector.broadcast %17 : vector<2x16x1xf32> to vector<2x16x32xf32>
    %22 = arith.mulf %21, %20 : vector<2x16x32xf32>
    %23 = vector.shape_cast %3 : vector<1x32xf32> to vector<1x1x32xf32>
    %24 = vector.broadcast %23 : vector<1x1x32xf32> to vector<2x16x32xf32>
    %25 = arith.addf %22, %24 : vector<2x16x32xf32>
    %cst_12 = arith.constant 0.000000e+00 : f32
    %26 = vector.broadcast %cst_12 : f32 to vector<2x16x32xf32>
    %27 = arith.maximumf %25, %26 : vector<2x16x32xf32>
    %c0_13 = arith.constant 0 : index
    %c0_14 = arith.constant 0 : index
    %c0_15 = arith.constant 0 : index
    %28 = vector.load %arg4[%c0_13, %c0_14, %c0_15] : memref<2x16x32xf32, #tpu.memory_space<vmem>>, vector<2x16x32xf32>
    tpu.vector_store %arg4[%c0_13, %c0_14, %c0_15], %27 {strides = array<i32>} : memref<2x16x32xf32, #tpu.memory_space<vmem>>, vector<2x16x32xf32>,
    return
  }
}

</mosaic_0001>

<bundles_post_ra>
// kernel: gcn_forward_pallas.1
= control target key start
LH: loop header
LB: loop body
LE: loop exit
PB: predicated region body
PF: predicated region fallthrough
CT: control target
= control target key end

     0   :  { %9 = vsyncpa [#allocation3], 0  ;;  %s351_s0 = inlined_call_operand.hbm [shape: f32[2,16,32], index: 0, kind: input, shape index: {}]   ;;  %s352_s1 = inlined_call_operand.hbm [shape: f32[2,16,16], index: 1, kind: input, shape index: {}]   ;;  %s353_s2 = inlined_call_operand.hbm [shape: f32[32,32], index: 2, kind: input, shape index: {}]   ;;  %s354_s3 = inlined_call_operand.vmem [shape: f32[1,32], index: 3, kind: input, shape index: {}]   ;;  %s355_s4 = inlined_call_operand.hbm [shape: f32[2,16,32], index: 4, kind: output, shape index: {}]  }
   0x1   :  { %10 = vsyncpa [#allocation6], 0 }
   0x2   :  { %11 = vsyncpa [#allocation4], 0  ;;  %s29_s17 = sshll.u32 %s352_s1, 4  ;;  %s276_s18 = smov [#allocation5]   ;;  %s30_s17 = int_to_ptr.hbm [resolvable:$true] %s29_s17 }
   0x3   :  { %s31_s19 = sshll.u32 %s276_s18, 4  ;;  %s16_s22 = sshll.u32 %s351_s0, 4  ;;  %s32_s19 = int_to_ptr.vmem [resolvable:$true] %s31_s19  ;;  %s17_s22 = int_to_ptr.hbm [resolvable:$true] %s16_s22 }
   0x4   :  { %s277_s23 = smov 128   ;;  %s278_s24 = smov 8  }
   0x5   :  { %37 = dma.hbm_to_vmem [thread:$0]  %s30_s17, 512, %s32_s19, [#allocation6], %s277_s23, %s277_s23, %s278_s24  }
   0x6   :  { %s279_s25 = smov [#allocation2]   ;;  %s42_s1 = sshll.u32 %s353_s2, 4  ;;  %s43_s1 = int_to_ptr.hbm [resolvable:$true] %s42_s1 }
   0x7   :  { %s18_s26 = sshll.u32 %s279_s25, 4  ;;  %s280_s0 = smov [#allocation7]   ;;  %s19_s26 = int_to_ptr.vmem [resolvable:$true] %s18_s26 }
   0x8   :  { %24 = dma.hbm_to_vmem [thread:$0]  %s17_s22, 512, %s19_s26, [#allocation3], %s277_s23, %s277_s23, %s278_s24  }
   0x9   :  { %s44_s29 = sshll.u32 %s280_s0, 4  ;;  %s45_s29 = int_to_ptr.vmem [resolvable:$true] %s44_s29 }
   0xa   :  { %50 = dma.hbm_to_vmem [thread:$0]  %s43_s1, 512, %s45_s29, [#allocation6], %s277_s23, %s277_s23, %s278_s24  }
   0xb   :  { %270 = dma.done.wait [#allocation3], 512  }
   0xc   :  { %271 = vsyncadd [#allocation3], 4294966784 }
   0xd   :  { %272 = dma.done.wait [#allocation6], 1024  }
   0xe   :  { %273 = vsyncadd [#allocation6], 4294966272  ;;  %v78_v0 = vlaneseq  ;;  %vm93_vm1 = vcmask 261120   ;;  %vm111_vm2 = vcmask 130048   ;;  %v71_v6 = vld [vmem:[#allocation5 + $0x10] sm:$0xff]  ;;  %v73_v7 = vld [vmem:[#allocation7] sm:$0xff] }
   0xf   :  { %v69_v8 = vld [vmem:[#allocation5] sm:$0xff]  ;;  %v72_v12 = vld [vmem:[#allocation5 + $0x18] sm:$0xff]  ;;  %v74_v13 = vld [vmem:[#allocation7 + $0x8] sm:$0xff]  ;;  %s153_s8 = sshll.u32 %s355_s4, 4  ;;  %s154_s8 = int_to_ptr.hbm [resolvable:$true] %s153_s8 }
  0x10   :  { %v79_v1 = vshrl.u32 %v78_v0, 7  ;;  %v84_v2 = vand.u32 127, %v78_v0  ;;  %v75_v14 = vld [vmem:[#allocation7 + $0x10] sm:$0xff]  ;;  %v76_v18 = vld [vmem:[#allocation7 + $0x18] sm:$0xff]  ;;  %v70_v20 = vld [vmem:[#allocation5 + $0x8] sm:$0xff] }
  0x11   :  { %v67_v39 = vld [vmem:[#allocation2 + $0x10] sm:$0xff]  ;;  %v65_v40 = vld [vmem:[#allocation2] sm:$0xff]  ;;  %v68_v48 = vld [vmem:[#allocation2 + $0x18] sm:$0xff] }
  0x12   :  { %v80_v3 = vadd.s32 8, %v79_v1  ;;  %v81_v4 = vadd.s32 16, %v79_v1  ;;  %v82_v5 = vadd.s32 24, %v79_v1  ;;  %vm85_vm0 = vcmp.eq.s32.totalorder %v79_v1, %v84_v2  ;;  %v173_v43 = vld [vmem:[%s354_s3] ss:$0 sm:$0xff]  ;;  %v66_v49 = vld [vmem:[#allocation2 + $0x8] sm:$0xff] }
  0x13   :  { %v89_v9 = vsel %vm85_vm0, %v73_v7, 0.0  ;;  %v109_v10 = vsel %vm85_vm0, %v71_v6, 0.0  ;;  %v107_v11 = vsel %vm85_vm0, %v69_v8, 0.0  ;;  %s281_s3 = smov [#allocation8]  }
  0x14   :  { %vm87_vm3 = vcmp.eq.s32.totalorder %v81_v4, %v84_v2  ;;  %vm88_vm4 = vcmp.eq.s32.totalorder %v82_v5, %v84_v2  ;;  %vm86_vm5 = vcmp.eq.s32.totalorder %v80_v3, %v84_v2  ;;  %v94_v15 = vsel %vm93_vm1, %v89_v9, 0.0  ;;  %s151_s5 = sshll.u32 %s281_s3, 4  ;;  %s152_s5 = int_to_ptr.vmem [resolvable:$true] %s151_s5 }
  0x15   :  { %v118_v16 = vsel %vm111_vm2, %v109_v10, 0.0  ;;  %v112_v17 = vsel %vm111_vm2, %v107_v11, 0.0  ;;  %v90_v19 = vsel %vm86_vm5, %v74_v13, 0.0  ;;  %v91_v21 = vsel %vm87_vm3, %v75_v14, 0.0 }
  0x16   :  { %119 = vadd.xlane.f32.xlu1 %v118_v16  ;;  %113 = vadd.xlane.f32.xlu0 %v112_v17  ;;  %v92_v22 = vsel %vm88_vm4, %v76_v18, 0.0  ;;  %v95_v23 = vsel %vm93_vm1, %v90_v19, 0.0  ;;  %v97_v25 = vsel %vm93_vm1, %v91_v21, 0.0  ;;  %v110_v27 = vsel %vm86_vm5, %v72_v12, 0.0 }
  0x17   :  { %v96_v24 = vadd.f32 %v95_v23, %v94_v15  ;;  %v99_v26 = vsel %vm93_vm1, %v92_v22, 0.0  ;;  %v108_v28 = vsel %vm86_vm5, %v70_v20, 0.0  ;;  %v121_v31 = vsel %vm111_vm2, %v110_v27, 0.0 }
  0x18   :  { %v115_v32 = vsel %vm111_vm2, %v108_v28, 0.0 }
  0x19   :  { %v98_v29 = vadd.f32 %v97_v25, %v96_v24 }
  0x1b   :  { %v100_v30 = vadd.f32 %v99_v26, %v98_v29 }
  0x1d   :  { %v101_v33 = vrot.slane %v100_v30, 4 }
  0x1e   :  { %122 = vadd.xlane.f32.xlu1 %v121_v31  ;;  %116 = vadd.xlane.f32.xlu0 %v115_v32 }
  0x1f   :  { %v102_v34 = vadd.f32 %v101_v33, %v100_v30 }
  0x21   :  { %v103_v35 = vrot.slane %v102_v34, 2 }
  0x23   :  { %v104_v36 = vadd.f32 %v103_v35, %v102_v34 }
  0x25   :  { %v105_v37 = vrot.slane %v104_v36, 1 }
  0x27   :  { %v106_v38 = vadd.f32 %v105_v37, %v104_v36 }
  0x29   :  { %v126_v41 = vmul.f32 %v106_v38, %v67_v39  ;;  %v124_v42 = vmul.f32 %v106_v38, %v65_v40  ;;  %v127_v54 = vmul.f32 %v106_v38, %v68_v48  ;;  %v125_v55 = vmul.f32 %v106_v38, %v66_v49 }
  0x89   :  { %v120_v44 = vpop.xlane.xlu1 %119  ;;  %v114_v45 = vpop.xlane.xlu0 %113 }
  0x8a   :  { %v130_v46 = vmul.f32 %v126_v41, %v120_v44  ;;  %v128_v47 = vmul.f32 %v124_v42, %v114_v45 }
  0x8c   :  { %v137_v50 = vadd.f32 %v173_v43, %v130_v46  ;;  %v135_v51 = vadd.f32 %v173_v43, %v128_v47 }
  0x8e   :  { %v141_v52 = vmax.f32 %v137_v50, 0.0  ;;  %v139_v53 = vmax.f32 %v135_v51, 0.0 }
  0x90   :  { %145 = vst.msk [vmem:[#allocation8 + $0x10] sm:$0xff] %vm93_vm1, %v141_v52 }
  0x91   :  { %143 = vst.msk [vmem:[#allocation8] sm:$0xff] %vm93_vm1, %v139_v53  ;;  %v123_v56 = vpop.xlane.xlu1 %122  ;;  %v117_v57 = vpop.xlane.xlu0 %116 }
  0x92   :  { %v131_v58 = vmul.f32 %v127_v54, %v123_v56  ;;  %v129_v59 = vmul.f32 %v125_v55, %v117_v57 }
  0x94   :  { %v138_v60 = vadd.f32 %v173_v43, %v131_v58  ;;  %v136_v61 = vadd.f32 %v173_v43, %v129_v59 }
  0x96   :  { %v142_v62 = vmax.f32 %v138_v60, 0.0  ;;  %v140_v63 = vmax.f32 %v136_v61, 0.0 }
  0x98   :  { %146 = vst.msk [vmem:[#allocation8 + $0x18] sm:$0xff] %vm93_vm1, %v142_v62 }
  0x99   :  { %144 = vst.msk [vmem:[#allocation8 + $0x8] sm:$0xff] %vm93_vm1, %v140_v63 }
  0x9a   :  { %159 = dma.vmem_to_hbm [thread:$0]  %s152_s5, 512, %s154_s8, [#allocation4], %s277_s23, %s277_s23, %s278_s24  }
  0x9b   :  { %274 = dma.done.wait [#allocation4], 512  }
  0x9c   :  { %275 = vsyncadd [#allocation4], 4294966784 }
  0x9d   :  { %164 = vsyncpa [#allocation3], 1 }
  0x9e   :  { %165 = vsyncpa [#allocation6], 1 }
  0x9f   :  { %166 = vsyncpa [#allocation4], 1 }

</bundles_post_ra>
